<compile_context>
chip_gen: v5e
topology: v5e:2x2
jax: 0.10.0
libtpu: 0.0.40
codegen_flags: <defaults>
</compile_context>

<pallas_src>
import functools

import jax
import jax.numpy as jnp
from jax.experimental import pallas as pl
from jax.experimental.pallas import tpu as pltpu


def _round_up(x, m):
    return (x + m - 1) // m * m


def _seq_classifier_kernel(x_ref, wt_ref, b_ref, o_ref, *, precision=None):
    # x_ref : (tm, K)   row tile of flattened tokens (the only per-step stream)
    # wt_ref: (K, N)    pre-transposed weight, resident across the grid
    # b_ref : (1, N)    bias row, resident across the grid
    # o_ref : (tm, N)   output tile (N == num_labels, full-array dim)
    y = jnp.dot(
        x_ref[...],
        wt_ref[...],
        preferred_element_type=jnp.float32,
        precision=precision,
    )
    o_ref[...] = (y + b_ref[...].astype(jnp.float32)).astype(o_ref.dtype)


def _vmem_budget_bytes():
    """Usable VMEM budget for this kernel's buffers, per chip generation."""
    cap = 64 << 20  # conservative default == v7x physical VMEM
    try:
        info = pltpu.get_tpu_info()
        cap = int(getattr(info, "vmem_capacity_bytes", cap))
    except Exception:
        pass
    # Leave ~25% of physical VMEM for Mosaic internal scratch / semaphores:
    # ~48 MiB on v7x (64 MiB physical), ~96 MiB on v5e/v6e (128 MiB physical).
    return max(32 << 20, (cap * 3) // 4)


def _buffer_bytes(tm, K, Np, in_itemsize, out_itemsize):
    """VMEM needed: multi-buffered x/out tiles + resident weight + bias."""
    return (2 * tm * K * in_itemsize       # x tiles (double-buffered)
            + 2 * tm * Np * out_itemsize   # out tiles (double-buffered)
            + 2 * K * Np * in_itemsize     # weight (counted x2 to stay safe even
                                           #  if single-buffering is ignored)
            + 2 * 8 * Np * in_itemsize)    # bias row (sublane/lane padded)


def _choose_tm(M, K, Np, in_itemsize, out_itemsize, budget_bytes, tm_max=2048):
    """Largest power-of-two row tile <= tm_max whose buffers fit the budget."""
    tm = tm_max
    while tm > 8 and _buffer_bytes(tm, K, Np, in_itemsize, out_itemsize) > budget_bytes:
        tm //= 2
    # Never tile larger than the (8-aligned) token count.
    tm = max(8, min(tm, _round_up(M, 8)))
    # Guarantee >= 2 grid steps when there is enough work, so the "parallel"
    # grid axis can shard across both TensorCores on v7x (no harm on v5e/v6e).
    if M > 8:
        tm = min(tm, _round_up(pl.cdiv(M, 2), 8))
    return max(8, _round_up(tm, 8))


def seq_classifier_forward(x, weight_t, bias_row, *, tm=None, use_bf16=False,
                           precision=None):
    """Pallas forward: y = x @ weight_t + bias_row (== nn.Linear on last dim).

    x        : (..., input_dim)
    weight_t : (input_dim, num_labels)   -- nn.Linear weight, pre-transposed
    bias_row : (1, num_labels)
    """
    *lead, K = x.shape
    Kw, num_labels = weight_t.shape
    assert Kw == K, "weight_t must be (input_dim, num_labels)"
    M = 1
    for d in lead:
        M *= int(d)

    out_dtype = x.dtype
    x2d = x.reshape(M, K)
    if use_bf16:
        # Optional bandwidth optimization (changes numerics vs f32 reference).
        x2d = x2d.astype(jnp.bfloat16)
        weight_t = weight_t.astype(jnp.bfloat16)

    in_itemsize = jnp.dtype(x2d.dtype).itemsize
    out_itemsize = jnp.dtype(out_dtype).itemsize
    # Lane-padded label width used only for VMEM accounting (vregs pad to 128).
    Np = _round_up(num_labels, 128)

    budget = _vmem_budget_bytes()
    if tm is None:
        tm = _choose_tm(M, K, Np, in_itemsize, out_itemsize, budget)
    tm = max(8, _round_up(int(tm), 8))
    grid_m = pl.cdiv(M, tm)  # partial trailing block handles M % tm != 0

    cost = pl.CostEstimate(
        flops=2 * M * K * num_labels,
        transcendentals=0,
        bytes_accessed=((M * K + K * num_labels) * in_itemsize
                        + (num_labels + M * num_labels) * out_itemsize),
    )

    kernel = functools.partial(_seq_classifier_kernel, precision=precision)

    out2d = pl.pallas_call(
        kernel,
        out_shape=jax.ShapeDtypeStruct((M, num_labels), out_dtype),
        grid_spec=pltpu.PrefetchScalarGridSpec(
            num_scalar_prefetch=0,
            grid=(grid_m,),
            in_specs=[
                # x row tile: the only per-step HBM stream.
                pl.BlockSpec((tm, K), lambda i: (i, 0)),
                # Resident W^T and bias: constant index_map -> fetched once;
                # single-buffered to hand the VMEM back to larger row tiles.
                pl.BlockSpec((K, num_labels), lambda i: (0, 0),
                             pipeline_mode=pl.Buffered(1)),
                pl.BlockSpec((1, num_labels), lambda i: (0, 0),
                             pipeline_mode=pl.Buffered(1)),
            ],
            out_specs=pl.BlockSpec((tm, num_labels), lambda i: (i, 0)),
        ),
        compiler_params=pltpu.CompilerParams(
            dimension_semantics=("parallel",),
            vmem_limit_bytes=int(budget),
        ),
        cost_estimate=cost,
    )(x2d, weight_t, bias_row)

    # No slicing needed: the kernel already wrote exactly (M, num_labels).
    return out2d.reshape(*lead, num_labels)


class SeqClassifierPallas:
    """JAX/Pallas port of SeqClassifier (eval mode: dropout(0.0) == identity)."""

    def __init__(self, input_dim, num_seq_labels, dropout_rate=0.0, key=None,
                 use_bf16=False):
        if key is None:
            key = jax.random.PRNGKey(0)
        kw, kb = jax.random.split(key)
        # Deterministic init mimicking nn.Linear's uniform(-1/sqrt(fan_in), +).
        bound = 1.0 / (input_dim ** 0.5)
        self.weight = jax.random.uniform(
            kw, (num_seq_labels, input_dim), jnp.float32, -bound, bound)
        self.bias = jax.random.uniform(
            kb, (num_seq_labels,), jnp.float32, -bound, bound)
        # One-time layout plumbing, hoisted out of the per-call path.
        self.weight_t = jnp.asarray(self.weight.T)              # (input_dim, N)
        self.bias_row = self.bias.reshape(1, num_seq_labels)    # (1, N)
        self.dropout_rate = dropout_rate
        self.use_bf16 = use_bf16
        # TODO(synk): training-mode dropout (rate > 0) would need pltpu.prng_*
        # masking inside the kernel; this port implements eval-mode (identity)
        # dropout only, matching the reference's default dropout_rate=0.0.

    def __call__(self, x):
        return seq_classifier_forward(x, self.weight_t, self.bias_row,
                                      use_bf16=self.use_bf16)


if __name__ == "__main__":
    key = jax.random.PRNGKey(0)
    k_in, k_params = jax.random.split(key)

    batch, seq, input_dim, num_labels = 2, 8, 32, 8
    x = jax.random.normal(k_in, (batch, seq, input_dim), dtype=jnp.float32)

    model = SeqClassifierPallas(input_dim, num_labels, dropout_rate=0.0, key=k_params)
    out = jax.block_until_ready(model(x))

    # Reference check (pure JAX) against nn.Linear semantics.
    ref = x @ model.weight.T + model.bias
    assert out.shape == (batch, seq, num_labels)
    assert jnp.allclose(out, ref, atol=1e-5, rtol=1e-5)

    # Shape where batch*seq is NOT a multiple of the row tile -> exercises the
    # partial-trailing-block path (masked writes on the last tile, no jnp.pad).
    x2 = jax.random.normal(k_in, (3, 7, input_dim), dtype=jnp.float32)
    out2 = jax.block_until_ready(
        seq_classifier_forward(x2, model.weight_t, model.bias_row))
    ref2 = x2 @ model.weight.T + model.bias
    assert out2.shape == (3, 7, num_labels)
    assert jnp.allclose(out2, ref2, atol=1e-5, rtol=1e-5)

    print("KERNEL_OK")
</pallas_src>

<mosaic_0001>
module attributes {stable_mosaic.version = 11 : i64} {
  func.func @_seq_classifier_kernel(%arg0: i32, %arg1: memref<8x32xf32, #tpu.memory_space<vmem>>, %arg2: memref<32x8xf32, #tpu.memory_space<vmem>>, %arg3: memref<1x8xf32, #tpu.memory_space<vmem>>, %arg4: memref<8x8xf32, #tpu.memory_space<vmem>>) attributes {dimension_semantics = [#tpu.dimension_semantics<parallel>], iteration_bounds = array<i64: 2>, scalar_prefetch = 0 : i64, scratch_operands = 0 : i64, tpu.core_type = #tpu.core_type<tc>, window_params = [{transform_indices = @transform_0, window_bounds = array<i64: 8, 32>}, {pipeline_mode = #tpu.pipeline_mode<synchronous>, transform_indices = @transform_1, window_bounds = array<i64: 32, 8>}, {pipeline_mode = #tpu.pipeline_mode<synchronous>, transform_indices = @transform_2, window_bounds = array<i64: 1, 8>}, {transform_indices = @transform_3, window_bounds = array<i64: 8, 8>}]} {
    %c0 = arith.constant 0 : index
    %c0_0 = arith.constant 0 : index
    %0 = vector.load %arg1[%c0, %c0_0] : memref<8x32xf32, #tpu.memory_space<vmem>>, vector<8x32xf32>
    %c0_1 = arith.constant 0 : index
    %c0_2 = arith.constant 0 : index
    %1 = vector.load %arg2[%c0_1, %c0_2] : memref<32x8xf32, #tpu.memory_space<vmem>>, vector<32x8xf32>
    %cst = arith.constant dense<0.000000e+00> : vector<8x8xf32>
    %2 = tpu.matmul %0, %1, %cst {dimension_numbers = #tpu.dot_dimension_numbers<[1], [0], [0], [1], [0, 0, 1, 1], [], []>} : vector<8x32xf32>, vector<32x8xf32>, vector<8x8xf32> -> vector<8x8xf32>
    %c0_3 = arith.constant 0 : index
    %c0_4 = arith.constant 0 : index
    %3 = vector.load %arg3[%c0_3, %c0_4] : memref<1x8xf32, #tpu.memory_space<vmem>>, vector<1x8xf32>
    %4 = vector.broadcast %3 : vector<1x8xf32> to vector<8x8xf32>
    %5 = arith.addf %2, %4 : vector<8x8xf32>
    %c0_5 = arith.constant 0 : index
    %c0_6 = arith.constant 0 : index
    %6 = vector.load %arg4[%c0_5, %c0_6] : memref<8x8xf32, #tpu.memory_space<vmem>>, vector<8x8xf32>
    tpu.vector_store %arg4[%c0_5, %c0_6], %5 {strides = array<i32>} : memref<8x8xf32, #tpu.memory_space<vmem>>, vector<8x8xf32>,
    return
  }
  func.func @transform_0(%arg0: i32) -> (i32, i32) {
    %c0_i32 = arith.constant 0 : i32
    %c0_i32_0 = arith.constant 0 : i32
    return %arg0, %c0_i32 : i32, i32
  }
  func.func @transform_1(%arg0: i32) -> (i32, i32) {
    %c0_i32 = arith.constant 0 : i32
    %c0_i32_0 = arith.constant 0 : i32
    %c0_i32_1 = arith.constant 0 : i32
    return %c0_i32, %c0_i32_0 : i32, i32
  }
  func.func @transform_2(%arg0: i32) -> (i32, i32) {
    %c0_i32 = arith.constant 0 : i32
    %c0_i32_0 = arith.constant 0 : i32
    %c0_i32_1 = arith.constant 0 : i32
    return %c0_i32, %c0_i32_0 : i32, i32
  }
  func.func @transform_3(%arg0: i32) -> (i32, i32) {
    %c0_i32 = arith.constant 0 : i32
    %c0_i32_0 = arith.constant 0 : i32
    return %arg0, %c0_i32 : i32, i32
  }
}

</mosaic_0001>

<bundles_post_ra>
// kernel: tpu_custom_call.1
= control target key start
LH: loop header
LB: loop body
LE: loop exit
PB: predicated region body
PF: predicated region fallthrough
CT: control target
= control target key end

     0   :  { %s301_s12 = smov 0   ;;  %s333_s0 = inlined_call_operand.vmem [shape: f32[16,32], index: 0, kind: input, shape index: {}]   ;;  %s334_s1 = inlined_call_operand.vmem [shape: f32[32,8], index: 1, kind: input, shape index: {}]   ;;  %s335_s2 = inlined_call_operand.vmem [shape: f32[1,8], index: 2, kind: input, shape index: {}]   ;;  %s336_s3 = inlined_call_operand.vmem [shape: f32[16,8], index: 3, kind: output, shape index: {}]  }
   0x1 LB: > { %s254_s13 = sadd.s32 4294967295, %s279_s12   ;;  %p258_p0 = scmp.ge.s32.totalorder %s279_s12, 1  ;;  %s279_s12 = sphi %s301_s12, %s13_s12  }
   0x2   : > { %p136_p1 = scmp.lt.s32.totalorder %s279_s12, 3 }
   0x4   : > { %p137_p2 = pnand %p258_p0, %p136_p1 }
   0x5   : > { %p158_p3 = scmp.lt.s32.totalorder (!%p137_p2), %s254_s13, 1 }
   0x6   : > { %140 = sbr.rel (%p137_p2) target bundleno = 148 (0x94), region = 32 }
   0xb   : > { %v170_v0 = vld [vmem:[%s334_s1 + $0x18] sm:$0xff]  ;;  %v169_v1 = vld [vmem:[%s334_s1 + $0x10] sm:$0xff]  ;;  %v168_v2 = vld [vmem:[%s334_s1 + $0x8] sm:$0xff]  ;;  %s338_s13 = smov (!%p158_p3, %s254_s13), 1  ;;  %vm175_vm0 = vcmask 261120   ;;  %vm199_vm1 = vcmask 64512  }
   0xc   : > { %191 = vmatpush.msra.mxu0 %v170_v0  ;;  %v167_v3 = vld [vmem:[%s334_s1] sm:$0xff]  ;;  %s259_s22 = sshll.u32 %s338_s13, 3 }
   0xd   : > { %s161_s25 = scalar_lea.vmem %s333_s0, %s259_s22  ;;  %v272_v5 = vld [vmem:[%s335_s2] ss:$0 sm:$0xff]  ;;  %s165_s30 = scalar_lea.vmem %s336_s3, %s259_s22 }
   0xe   : > { %192 = vmatpush.msra.mxu0 %v169_v1  ;;  %v166_v4 = vld [vmem:[%s161_s25] sm:$0xff] }
  0x10   : > { %193 = vmatpush.msra.mxu0 %v168_v2 }
  0x12   : > { %194 = vmatpush.msra.mxu0 %v167_v3 }
  0x13   : > { %261 = vmatmul.msk.f32.vlgmr.msra.gmra.mxu0 %vm175_vm0, %v166_v4 }
  0x90   : > { %v196_v6 = vpop.f32.mrf.mxu0 }
  0x91   : > { %v197_v7 = vadd.f32 %v272_v5, %v196_v6 }
  0x93   : > { %200 = vst.msk [vmem:[%s165_s30] sm:$0xff] %vm199_vm1, %v197_v7 }
  0x94 PF: > { %s13_s12 = sadd.s32 1, %s279_s12  }
  0x95   : > { %p10_p4 = scmp.ge.s32.totalorder %s13_s12, 4  }
  0x97   :  { %12 = sbr.rel (!%p10_p4) target bundleno = 1 (0x1), region = 62 }

</bundles_post_ra>
